<compile_context>
chip_gen: v6e
topology: v6e:2x2x1
jax: 0.10.0
libtpu: 0.0.40
codegen_flags: <defaults>
</compile_context>

<pallas_src>
import functools

import jax
import jax.numpy as jnp
from jax.experimental import pallas as pl
from jax.experimental.pallas import tpu as pltpu


# ----------------------------------------------------------------------------- kernels

def _grn_fused_kernel(gb_ref, x_ref, o_ref, *, inv_c):
    """Single-pass GRN for one batch element.  x_ref: (1, C, S) with S = H*W."""
    gamma = gb_ref[0]                                   # scalars from SMEM
    beta = gb_ref[1]
    x = x_ref[...].astype(jnp.float32)                  # (1, C, S)
    # Per-channel L2 norm over the lane-dense flattened spatial axis:
    # S/128 whole-vreg VALU adds + one cross-lane XLU reduce per channel row.
    gx = jnp.sqrt(jnp.sum(x * x, axis=-1, keepdims=True))        # (1, C, 1)
    # Channel mean = sum * (1/C); divide via EUP approx reciprocal.
    mean = jnp.sum(gx, axis=1, keepdims=True) * inv_c             # (1, 1, 1)
    nx = gx * pl.reciprocal(mean + 1e-6, approx=True)             # (1, C, 1)
    o_ref[...] = (gamma * (x * nx) + beta + x).astype(o_ref.dtype)


def _grn_sumsq_kernel(x_ref, o_ref):
    """Pass 1 (tiled path): accumulate sum(x^2) over spatial tiles into (1, C, 1)."""
    @pl.when(pl.program_id(1) == 0)
    def _():
        o_ref[...] = jnp.zeros_like(o_ref)
    x = x_ref[...].astype(jnp.float32)                  # (1, C, TS)
    o_ref[...] += jnp.sum(x * x, axis=-1, keepdims=True)


def _grn_apply_kernel(gb_ref, gx2_ref, x_ref, o_ref, *, inv_c):
    """Pass 2 (tiled path): apply GRN (+ fused residual) to one spatial tile."""
    gamma = gb_ref[0]
    beta = gb_ref[1]
    x = x_ref[...].astype(jnp.float32)                  # (1, C, TS)
    gx = jnp.sqrt(gx2_ref[...])                         # (1, C, 1) f32
    mean = jnp.sum(gx, axis=1, keepdims=True) * inv_c   # (1, 1, 1)
    nx = gx * pl.reciprocal(mean + 1e-6, approx=True)
    o_ref[...] = (gamma * (x * nx) + beta + x).astype(o_ref.dtype)


# ----------------------------------------------------------------------------- wrapper

def global_response_norm(x_nchw, gamma, beta, *,
                         vmem_slab_limit_bytes=2 * 1024 * 1024,
                         spatial_tile=None):
    """GRN forward.  x_nchw: (B, C, H, W); gamma/beta: (1,1,1,1) scalars."""
    B, C, H, W = x_nchw.shape
    S = H * W
    dtype = x_nchw.dtype
    x = x_nchw.reshape(B, C, S)                         # free contiguous view
    gb = jnp.concatenate([gamma.reshape(-1), beta.reshape(-1)]).astype(jnp.float32)
    inv_c = 1.0 / C
    slab_bytes = C * S * x.dtype.itemsize

    smem_spec = pl.BlockSpec(memory_space=pltpu.MemorySpace.SMEM)

    if spatial_tile is None and slab_bytes <= vmem_slab_limit_bytes:
        # ---- fast path: one fused kernel, grid over batch --------------------
        out = pl.pallas_call(
            functools.partial(_grn_fused_kernel, inv_c=inv_c),
            grid=(B,),
            in_specs=[
                smem_spec,
                pl.BlockSpec((1, C, S), lambda b: (b, 0, 0)),
            ],
            out_specs=pl.BlockSpec((1, C, S), lambda b: (b, 0, 0)),
            out_shape=jax.ShapeDtypeStruct((B, C, S), dtype),
            compiler_params=pltpu.CompilerParams(dimension_semantics=("parallel",)),
        )(gb, x)
        return out.reshape(B, C, H, W)

    # ---- tiled two-pass path (large H*W, e.g. v7x's smaller VMEM) ------------
    if spatial_tile is None:
        budget = 512 * 1024                             # ~0.5 MiB per x tile
        ts = max(128, (budget // (C * x.dtype.itemsize)) // 128 * 128)
    else:
        ts = int(spatial_tile)
    s_pad = ((S + ts - 1) // ts) * ts
    if s_pad != S:
        # zero padding is exact for sum(x^2); padded columns are sliced off below.
        x = jnp.pad(x, ((0, 0), (0, 0), (0, s_pad - S)))
    T = s_pad // ts

    # pass 1: per-(batch, channel) sum of squares, accumulated across spatial tiles
    gx2 = pl.pallas_call(
        _grn_sumsq_kernel,
        grid=(B, T),
        in_specs=[pl.BlockSpec((1, C, ts), lambda b, t: (b, 0, t))],
        out_specs=pl.BlockSpec((1, C, 1), lambda b, t: (b, 0, 0)),
        out_shape=jax.ShapeDtypeStruct((B, C, 1), jnp.float32),
        compiler_params=pltpu.CompilerParams(
            dimension_semantics=("parallel", "arbitrary")),
    )(x)

    # pass 2: re-stream x and apply gamma*(x*Nx) + beta + x
    out = pl.pallas_call(
        functools.partial(_grn_apply_kernel, inv_c=inv_c),
        grid=(B, T),
        in_specs=[
            smem_spec,
            pl.BlockSpec((1, C, 1), lambda b, t: (b, 0, 0)),
            pl.BlockSpec((1, C, ts), lambda b, t: (b, 0, t)),
        ],
        out_specs=pl.BlockSpec((1, C, ts), lambda b, t: (b, 0, t)),
        out_shape=jax.ShapeDtypeStruct((B, C, s_pad), dtype),
        compiler_params=pltpu.CompilerParams(
            dimension_semantics=("parallel", "parallel")),
    )(gb, gx2, x)

    return out[:, :, :S].reshape(B, C, H, W)


# ----------------------------------------------------------------------------- reference

def grn_reference(x, gamma, beta):
    """Pure-JAX transcription of the PyTorch module (for validation)."""
    gx = jnp.sqrt(jnp.sum(x * x, axis=(2, 3), keepdims=True))     # (B, C, 1, 1)
    nx = gx / (jnp.mean(gx, axis=1, keepdims=True) + 1e-6)        # (B, C, 1, 1)
    return gamma * (x * nx) + beta + x


# ----------------------------------------------------------------------------- main

if __name__ == "__main__":
    key = jax.random.PRNGKey(0)
    kx, kg, kb = jax.random.split(key, 3)

    B, C, H, W = 2, 4, 16, 16
    x = jax.random.normal(kx, (B, C, H, W), jnp.float32)
    # PyTorch initializes gamma/beta to zero (output == x); use non-trivial values
    # so the normalization math is actually exercised.  Shapes match the module.
    gamma = jax.random.normal(kg, (1, 1, 1, 1), jnp.float32) * 0.5
    beta = jax.random.normal(kb, (1, 1, 1, 1), jnp.float32) * 0.5

    # fast single-pass path
    fwd = jax.jit(global_response_norm)
    y = fwd(x, gamma, beta)
    jax.block_until_ready(y)

    # force the tiled two-pass path as well (the v7x / large-resolution fallback)
    fwd_tiled = jax.jit(functools.partial(global_response_norm, spatial_tile=128))
    y_tiled = fwd_tiled(x, gamma, beta)
    jax.block_until_ready(y_tiled)

    y_ref = grn_reference(x, gamma, beta)
    assert y.shape == x.shape and y_tiled.shape == x.shape
    assert bool(jnp.all(jnp.isfinite(y))) and bool(jnp.all(jnp.isfinite(y_tiled)))
    err_fast = float(jnp.max(jnp.abs(y - y_ref)))
    err_tiled = float(jnp.max(jnp.abs(y_tiled - y_ref)))
    assert err_fast < 1e-2 and err_tiled < 1e-2, (err_fast, err_tiled)
    print("KERNEL_OK")
</pallas_src>

<mosaic_0001>
module attributes {stable_mosaic.version = 11 : i64} {
  func.func @_grn_fused_kernel(%arg0: i32, %arg1: memref<2xf32, #tpu.memory_space<smem>>, %arg2: memref<1x4x256xf32, #tpu.memory_space<vmem>>, %arg3: memref<1x4x256xf32, #tpu.memory_space<vmem>>) attributes {dimension_semantics = [#tpu.dimension_semantics<parallel>], iteration_bounds = array<i64: 2>, scalar_prefetch = 0 : i64, scratch_operands = 0 : i64, tpu.core_type = #tpu.core_type<tc>, window_params = [{transform_indices = @transform_0, window_bounds = array<i64: 2>}, {transform_indices = @transform_1, window_bounds = array<i64: 1, 4, 256>}, {transform_indices = @transform_2, window_bounds = array<i64: 1, 4, 256>}]} {
    %c0 = arith.constant 0 : index
    %0 = memref.load %arg1[%c0] : memref<2xf32, #tpu.memory_space<smem>>
    %c1 = arith.constant 1 : index
    %1 = memref.load %arg1[%c1] : memref<2xf32, #tpu.memory_space<smem>>
    %c0_0 = arith.constant 0 : index
    %c0_1 = arith.constant 0 : index
    %c0_2 = arith.constant 0 : index
    %2 = vector.load %arg2[%c0_0, %c0_1, %c0_2] : memref<1x4x256xf32, #tpu.memory_space<vmem>>, vector<1x4x256xf32>
    %3 = arith.mulf %2, %2 : vector<1x4x256xf32>
    %cst = arith.constant dense<0.000000e+00> : vector<1x4xf32>
    %4 = vector.multi_reduction <add>, %3, %cst [2] : vector<1x4x256xf32> to vector<1x4xf32>
    %5 = vector.shape_cast %4 : vector<1x4xf32> to vector<1x4x1xf32>
    %6 = math.sqrt %5 : vector<1x4x1xf32>
    %cst_3 = arith.constant dense<0.000000e+00> : vector<1x1xf32>
    %7 = vector.multi_reduction <add>, %6, %cst_3 [1] : vector<1x4x1xf32> to vector<1x1xf32>
    %8 = vector.shape_cast %7 : vector<1x1xf32> to vector<1x1x1xf32>
    %cst_4 = arith.constant 2.500000e-01 : f32
    %9 = vector.broadcast %cst_4 : f32 to vector<1x1x1xf32>
    %10 = arith.mulf %8, %9 : vector<1x1x1xf32>
    %cst_5 = arith.constant 9.99999997E-7 : f32
    %11 = vector.broadcast %cst_5 : f32 to vector<1x1x1xf32>
    %12 = arith.addf %10, %11 : vector<1x1x1xf32>
    %13 = tpu.reciprocal %12 {approx = true} : vector<1x1x1xf32> -> vector<1x1x1xf32>
    %14 = vector.broadcast %13 : vector<1x1x1xf32> to vector<1x4x1xf32>
    %15 = arith.mulf %6, %14 : vector<1x4x1xf32>
    %16 = vector.broadcast %15 : vector<1x4x1xf32> to vector<1x4x256xf32>
    %17 = arith.mulf %2, %16 : vector<1x4x256xf32>
    %18 = vector.broadcast %0 : f32 to vector<1x4x256xf32>
    %19 = arith.mulf %18, %17 : vector<1x4x256xf32>
    %20 = vector.broadcast %1 : f32 to vector<1x4x256xf32>
    %21 = arith.addf %19, %20 : vector<1x4x256xf32>
    %22 = arith.addf %21, %2 : vector<1x4x256xf32>
    %c0_6 = arith.constant 0 : index
    %c0_7 = arith.constant 0 : index
    %c0_8 = arith.constant 0 : index
    %23 = vector.load %arg3[%c0_6, %c0_7, %c0_8] : memref<1x4x256xf32, #tpu.memory_space<vmem>>, vector<1x4x256xf32>
    tpu.vector_store %arg3[%c0_6, %c0_7, %c0_8], %22 {strides = array<i32>} : memref<1x4x256xf32, #tpu.memory_space<vmem>>, vector<1x4x256xf32>,
    return
  }
  func.func @transform_0(%arg0: i32) -> i32 {
    %c0_i32 = arith.constant 0 : i32
    %c0_i32_0 = arith.constant 0 : i32
    return %c0_i32 : i32
  }
  func.func @transform_1(%arg0: i32) -> (i32, i32, i32) {
    %c0_i32 = arith.constant 0 : i32
    %c0_i32_0 = arith.constant 0 : i32
    %c0_i32_1 = arith.constant 0 : i32
    return %arg0, %c0_i32, %c0_i32_0 : i32, i32, i32
  }
  func.func @transform_2(%arg0: i32) -> (i32, i32, i32) {
    %c0_i32 = arith.constant 0 : i32
    %c0_i32_0 = arith.constant 0 : i32
    %c0_i32_1 = arith.constant 0 : i32
    return %arg0, %c0_i32, %c0_i32_0 : i32, i32, i32
  }
}

</mosaic_0001>

<bundles_post_ra>
// kernel: global_response_norm.1
= control target key start
LH: loop header
LB: loop body
LE: loop exit
PB: predicated region body
PF: predicated region fallthrough
CT: control target
= control target key end

     0   :  { %7 = vsyncpa [#allocation3], 0  ;;  %s356_s9 = smov 0   ;;  %s397_s0 = inlined_call_operand.vmem [shape: f32[2], index: 0, kind: input, shape index: {}]   ;;  %s398_s1 = inlined_call_operand.vmem [shape: f32[2,4,256], index: 1, kind: input, shape index: {}]   ;;  %s399_s2 = inlined_call_operand.vmem [shape: f32[2,4,256], index: 2, kind: output, shape index: {}]  }
   0x1 LB: > { %s272_s10 = sadd.s32 4294967295, %s337_s9   ;;  %p274_p0 = scmp.ge.s32.totalorder %s337_s9, 1  ;;  %s337_s9 = sphi %s356_s9, %s13_s9  }
   0x2   : > { %p91_p1 = scmp.lt.s32.totalorder %s337_s9, 3  ;;  %s104_s13 = sshll.u32 %s397_s0, 4  ;;  %s105_s13 = int_to_ptr.vmem [resolvable:$true] %s104_s13 }
   0x3   : > { %p296_p3 = scmp.eq.s32.totalorder %s272_s10, 0  ;;  %s312_s15 = scalar_lea.vmem %s105_s13, 16 }
   0x4   : > { %p367_p2 = pnand %p274_p0, %p91_p1  ;;  %p313_p6 = scmp.ne.s32.totalorder %s105_s13, %s312_s15 }
   0x5   : > { %p320_p10 = scmp.lt.s32.totalorder %s105_s13, %s105_s13  ;;  %p321_p11 = scmp.lt.s32.totalorder %s312_s15, %s312_s15 }
   0x6   : > { %p292_p4 = pneg %p367_p2 }
   0x7   : > { %p322_p12 = por %p321_p11, %p320_p10 }
   0x8   : > { %p293_p5 = pnand %p296_p3, %p292_p4 }
   0xa   : > { %p314_p7 = pneg %p293_p5 }
   0xc   : > { %p315_p8 = pnand %p314_p7, %p313_p6 }
   0xe   : > { %p316_p9 = pneg %p315_p8 }
  0x10   : > { %p323_p13 = pnand %p322_p12, %p316_p9 }
  0x12   : > { %326 = shalt.err (!%p323_p13)
}
  0x13   : > { %s339_s16 = smov [#allocation2]   ;;  %125 = sbr.rel (%p367_p2) target bundleno = 240 (0xf0), region = 28 }
  0x14   : > { %295 = dma.vmem_to_smem (!%p293_p5), %s105_s13, 16, %s339_s16, [#allocation3]  }
  0x18   : > { %332 = dma.done.wait (%p296_p3), [#allocation3], 16  }
  0x19   : > { %334 = vsyncadd (%p296_p3), [#allocation3], 4294967280 }
  0x1a   : > { %131 = sfence }
  0x1b   : > { %p148_p0 = scmp.lt.s32.totalorder %s272_s10, 1  ;;  %vm165_vm0 = vcmask 1043456   ;;  %v340_v21 = vmov 839922192   ;;  %v193_v23 = vlaneseq  ;;  %s158_s21 = sld [smem:[#allocation2]] }
  0x1c   : > { %v191_v22 = vunpack.c.l.s4 %v340_v21  ;;  %s283_s22 = sld [smem:[#allocation2 + $0x1]] }
  0x1d   : > { %s402_s10 = smov (!%p148_p0, %s272_s10), 1  ;;  %v194_v25 = vshrl.u32 %v193_v23, 7 }
  0x1e   : > { %s286_s17 = sshll.u32 %s402_s10, 3  ;;  %v192_v24 = vunpack.c.0.s8 %v191_v22 }
  0x1f   : > { %s152_s20 = scalar_lea.vmem %s398_s1, %s286_s17  ;;  %s157_s25 = scalar_lea.vmem %s399_s2, %s286_s17 }
  0x20   : > { %v160_v0 = vld [vmem:[%s152_s20] sm:$0xff]  ;;  %v195_v26 = vsub.s32 %v192_v24, %v194_v25 }
  0x21   : > { %v161_v1 = vmul.f32 %v160_v0, %v160_v0  ;;  %v199_v30 = vstv %s158_s21 }
  0x22   : > { %v201_v32 = vstv %s283_s22 }
  0x23   : > { %v163_v2 = vcombine.high %v161_v1, %v161_v1  ;;  %v166_v3 = vsel %vm165_vm0, %v161_v1, 0.0 }
  0x25   : > { %v167_v4 = vsel %vm165_vm0, %v163_v2, 0.0 }
  0x26   : > { %v168_v5 = vadd.f32 %v167_v4, %v166_v3 }
  0x28   : > { %169 = vadd.xlane.f32.xlu0 %v168_v5 }
  0xb1   : > { %v170_v6 = vpop.xlane.xlu0 %169 }
  0xb2   : > { %308 = vrsqrt.f32 %v170_v6  ;;  %vm173_vm1 = vcmp.eq.f32.partialorder %v170_v6, inf  ;;  %v176_v9 = vand.u32 2147483648, %v170_v6  ;;  %vm175_vm2 = vcmp.eq.f32.partialorder %v170_v6, 0.0 }
  0xbf   : > { %v309_v7 = vpop.eup %308 }
  0xc0   : > { %v172_v8 = vmul.f32 %v309_v7, %v170_v6 }
  0xc2   : > { %v174_v10 = vsel %vm173_vm1, %v170_v6, %v172_v8 }
  0xc3   : > { %v177_v11 = vsel %vm175_vm2, %v176_v9, %v174_v10 }
  0xc4   : > { %v178_v12 = vsel %vm165_vm0, %v177_v11, 0.0 }
  0xc5   : > { %v179_v13 = vrot.slane %v178_v12, 4 }
  0xc7   : > { %v180_v14 = vadd.f32 %v179_v13, %v178_v12 }
  0xc9   : > { %v181_v15 = vrot.slane %v180_v14, 2 }
  0xcb   : > { %v182_v16 = vadd.f32 %v181_v15, %v180_v14 }
  0xcd   : > { %v183_v17 = vrot.slane %v182_v16, 1 }
  0xcf   : > { %v184_v18 = vadd.f32 %v183_v17, %v182_v16 }
  0xd1   : > { %v185_v19 = vmul.f32 0.25, %v184_v18 }
  0xd3   : > { %v186_v20 = vadd.f32 1e-06, %v185_v19 }
  0xd5   : > { %310 = vrcp.f32 %v186_v20 }
  0xe2   : > { %v311_v27 = vpop.eup %310 }
  0xe3   : > { %v188_v28 = vmul.f32 %v311_v27, %v177_v11 }
  0xe5   : > { %v196_v29 = vrot.slane %v188_v28, %v195_v26 }
  0xe7   : > { %v198_v31 = vmul.f32 %v196_v29, %v160_v0 }
  0xe9   : > { %v200_v33 = vmul.f32 %v199_v30, %v198_v31 }
  0xeb   : > { %v202_v34 = vadd.f32 %v201_v32, %v200_v33 }
  0xed   : > { %v203_v35 = vadd.f32 %v202_v34, %v160_v0 }
  0xef   : > { %204 = vst [vmem:[%s157_s25] sm:$0xff] %v203_v35 }
  0xf0 PF: > { %s13_s9 = sadd.s32 1, %s337_s9  }
  0xf1   : > { %p10_p1 = scmp.ge.s32.totalorder %s13_s9, 4  }
  0xf3   :  { %12 = sbr.rel (!%p10_p1) target bundleno = 1 (0x1), region = 63 }
  0xf8   :  { %226 = vsyncpa [#allocation3], 1 }
  0xf9   :  { %228 = vsyncpa [#allocation3 + $0x1], 1 }

</bundles_post_ra>
